<compile_context>
chip_gen: v7x
topology: tpu7x:2x2x1
jax: 0.10.0
libtpu: 0.0.40
codegen_flags: <defaults>
</compile_context>

<pallas_src>
import jax
import jax.numpy as jnp
from jax.experimental import pallas as pl
from jax.experimental.pallas import tpu as pltpu


# ---------------------------------------------------------------------------
# Phase 1: the whole LSTM recurrence in ONE kernel invocation.
# ---------------------------------------------------------------------------
def lstm_recurrence_kernel(x_ref, wih_ref, whh_ref, b_ref, h_out_ref):
    # x_ref:    (T, B, E)  f32   time-major inputs
    # wih_ref:  (E, 4H)    bf16  fused input->gates weight, columns (i,f,o,g)
    # whh_ref:  (H, 4H)    bf16  fused hidden->gates weight
    # b_ref:    (1, 4H)    f32   b_ih + b_hh
    # h_out_ref:(T, B, H)  f32   hidden state per timestep
    T, B, _ = x_ref.shape
    H = h_out_ref.shape[-1]

    wih = wih_ref[...]
    whh = whh_ref[...]
    b = b_ref[...]

    def step(t, carry):
        h_prev, c_prev = carry                       # both (B, H) f32
        xt = x_ref[t].astype(jnp.bfloat16)           # (B, E)
        gates = (jnp.dot(xt, wih, preferred_element_type=jnp.float32)
                 + jnp.dot(h_prev.astype(jnp.bfloat16), whh,
                           preferred_element_type=jnp.float32)
                 + b)                                # (B, 4H) f32
        sig = jax.nn.sigmoid(gates[:, : 3 * H])      # one sigmoid over i|f|o
        g_g = jnp.tanh(gates[:, 3 * H:])             # one tanh over g
        i_g = sig[:, :H]
        f_g = sig[:, H: 2 * H]
        o_g = sig[:, 2 * H:]
        c_new = f_g * c_prev + i_g * g_g
        h_new = o_g * jnp.tanh(c_new)
        h_out_ref[t] = h_new
        return h_new, c_new

    h0 = jnp.zeros((B, H), jnp.float32)              # PyTorch default init
    c0 = jnp.zeros((B, H), jnp.float32)
    jax.lax.fori_loop(0, T, step, (h0, c0), unroll=True)


# ---------------------------------------------------------------------------
# Phase 2: batched vocab projection (T*B rows at once), tiled over V.
# ---------------------------------------------------------------------------
def vocab_projection_kernel(h_ref, wout_ref, bout_ref, out_ref):
    # h_ref:    (M, H)  f32   all T*B hidden rows (constant across the V grid)
    # wout_ref: (H, TV) bf16  streamed vocab tile of W_out
    # bout_ref: (1, TV) f32
    # out_ref:  (M, TV) f32   lane-dense batch-first output slab
    h = h_ref[...].astype(jnp.bfloat16)
    acc = jnp.dot(h, wout_ref[...], preferred_element_type=jnp.float32)
    out_ref[...] = (acc + bout_ref[...]).astype(out_ref.dtype)


def _pick_vocab_tile(V, max_tile=2048):
    """Largest multiple-of-128 tile <= max_tile dividing V (or V itself)."""
    if V <= max_tile:
        return V
    t = max_tile
    while t >= 128:
        if V % t == 0:
            return t
        t -= 128
    return V


def decoder_forward(features, captions, params):
    """features: (B, E) f32, captions: (B, S) int32 -> logits (B, S, V)."""
    B, E = features.shape
    H = params["whh"].shape[0]
    V = params["wout"].shape[1]

    # Glue (plain JAX): embedding gather done directly time-major so no large
    # activation transpose is needed anywhere in the pipeline.
    emb_tm = jnp.take(params["embed"], captions[:, :-1].T, axis=0)   # (T-1,B,E)
    x_tm = jnp.concatenate([features[None, :, :], emb_tm], axis=0)   # (T, B, E)
    T = x_tm.shape[0]

    # Phase 1: recurrence (everything resident in VMEM, single invocation).
    h_tm = pl.pallas_call(
        lstm_recurrence_kernel,
        out_shape=jax.ShapeDtypeStruct((T, B, H), jnp.float32),
    )(x_tm, params["wih"], params["whh"], params["b"])

    # Small (T*B*H) reorder so the projection runs over batch-first rows and
    # the large (B, T, V) logits never need a transpose.
    h_rows = jnp.transpose(h_tm, (1, 0, 2)).reshape(B * T, H)

    # Phase 2: projection, tiled & parallel over the vocab dimension.
    M = B * T
    TV = _pick_vocab_tile(V)
    # NOTE: for realistic V, the constant h_rows spec can additionally be
    # single-buffered (pipeline_mode=pl.Buffered(1)) and vmem_limit_bytes set
    # explicitly; irrelevant at these demo sizes.
    logits_rows = pl.pallas_call(
        vocab_projection_kernel,
        out_shape=jax.ShapeDtypeStruct((M, V), jnp.float32),
        grid_spec=pltpu.PrefetchScalarGridSpec(
            num_scalar_prefetch=0,
            grid=(V // TV,),
            in_specs=[
                pl.BlockSpec((M, H), lambda j: (0, 0)),    # all hidden rows
                pl.BlockSpec((H, TV), lambda j: (0, j)),   # streamed W_out tile
                pl.BlockSpec((1, TV), lambda j: (0, j)),   # bias tile
            ],
            out_specs=pl.BlockSpec((M, TV), lambda j: (0, j)),
        ),
        compiler_params=pltpu.CompilerParams(
            dimension_semantics=("parallel",)),
    )(h_rows, params["wout"], params["bout"])

    return logits_rows.reshape(B, T, V)


# ---------------------------------------------------------------------------
# Pure-JAX reference mirroring the PyTorch forward semantics.
# ---------------------------------------------------------------------------
def reference_forward(features, captions, params):
    emb = jnp.take(params["embed"], captions[:, :-1], axis=0)        # (B,S-1,E)
    x = jnp.concatenate([features[:, None, :], emb], axis=1)         # (B, T, E)
    B, T, _ = x.shape
    H = params["whh"].shape[0]
    wih = params["wih"].astype(jnp.float32)
    whh = params["whh"].astype(jnp.float32)
    wout = params["wout"].astype(jnp.float32)
    h = jnp.zeros((B, H), jnp.float32)
    c = jnp.zeros((B, H), jnp.float32)
    outs = []
    for t in range(T):
        g = x[:, t, :] @ wih + h @ whh + params["b"]
        i_g = jax.nn.sigmoid(g[:, :H])
        f_g = jax.nn.sigmoid(g[:, H:2 * H])
        o_g = jax.nn.sigmoid(g[:, 2 * H:3 * H])
        g_g = jnp.tanh(g[:, 3 * H:])
        c = f_g * c + i_g * g_g
        h = o_g * jnp.tanh(c)
        outs.append(h @ wout + params["bout"])
    return jnp.stack(outs, axis=1)


def init_params(key, embed_size, hidden_size, vocab_size):
    E, H, V = embed_size, hidden_size, vocab_size
    ks = jax.random.split(key, 7)
    scale = 1.0 / jnp.sqrt(H)
    uni = lambda k, shape: jax.random.uniform(k, shape, jnp.float32, -scale, scale)
    return {
        "embed": jax.random.normal(ks[0], (V, E), jnp.float32) * 0.1,
        # Fused LSTM gate weights, column order (i, f, o, g).  When importing
        # PyTorch weights (stacked i,f,g,o of shape (4H, E)/(4H, H)), permute
        # the gate blocks to (i,f,o,g) and transpose.
        "wih":  uni(ks[1], (E, 4 * H)).astype(jnp.bfloat16),
        "whh":  uni(ks[2], (H, 4 * H)).astype(jnp.bfloat16),
        "b":    uni(ks[3], (1, 4 * H)) + uni(ks[4], (1, 4 * H)),     # b_ih+b_hh
        "wout": uni(ks[5], (H, V)).astype(jnp.bfloat16),
        "bout": uni(ks[6], (1, V)),
    }


if __name__ == "__main__":
    embed_size, hidden_size, vocab_size = 32, 32, 128
    B, S = 8, 8  # batch, caption length -> T = 1 + (S-1) = 8 LSTM steps

    key = jax.random.PRNGKey(0)
    k_param, k_feat, k_cap = jax.random.split(key, 3)
    params = init_params(k_param, embed_size, hidden_size, vocab_size)

    features = jax.random.normal(k_feat, (B, embed_size), jnp.float32)
    captions = jax.random.randint(k_cap, (B, S), 0, vocab_size, jnp.int32)

    out = decoder_forward(features, captions, params)
    out = jax.block_until_ready(out)

    ref = reference_forward(features, captions, params)
    assert out.shape == (B, S, vocab_size), out.shape
    assert jnp.allclose(out, ref, atol=2e-2, rtol=2e-2), (
        float(jnp.max(jnp.abs(out - ref))))

    print("KERNEL_OK")
</pallas_src>

<mosaic_0001>
module attributes {stable_mosaic.version = 11 : i64} {
  func.func @lstm_recurrence_kernel(%arg0: memref<8x8x32xf32, #tpu.memory_space<vmem>>, %arg1: memref<32x128xbf16, #tpu.memory_space<vmem>>, %arg2: memref<32x128xbf16, #tpu.memory_space<vmem>>, %arg3: memref<1x128xf32, #tpu.memory_space<vmem>>, %arg4: memref<8x8x32xf32, #tpu.memory_space<vmem>>) attributes {dimension_semantics = [], scalar_prefetch = 0 : i64, scratch_operands = 0 : i64, tpu.core_type = #tpu.core_type<tc>} {
    %c0 = arith.constant 0 : index
    %c0_0 = arith.constant 0 : index
    %0 = vector.load %arg1[%c0, %c0_0] : memref<32x128xbf16, #tpu.memory_space<vmem>>, vector<32x128xbf16>
    %c0_1 = arith.constant 0 : index
    %c0_2 = arith.constant 0 : index
    %1 = vector.load %arg2[%c0_1, %c0_2] : memref<32x128xbf16, #tpu.memory_space<vmem>>, vector<32x128xbf16>
    %c0_3 = arith.constant 0 : index
    %c0_4 = arith.constant 0 : index
    %2 = vector.load %arg3[%c0_3, %c0_4] : memref<1x128xf32, #tpu.memory_space<vmem>>, vector<1x128xf32>
    %cst = arith.constant 0.000000e+00 : f32
    %3 = vector.broadcast %cst : f32 to vector<8x32xf32>
    %cst_5 = arith.constant 0.000000e+00 : f32
    %4 = vector.broadcast %cst_5 : f32 to vector<8x32xf32>
    %c0_i32 = arith.constant 0 : i32
    %5 = arith.index_cast %c0_i32 : i32 to index
    %c0_6 = arith.constant 0 : index
    %c0_7 = arith.constant 0 : index
    %6 = vector.load %arg0[%5, %c0_6, %c0_7] : memref<8x8x32xf32, #tpu.memory_space<vmem>>, vector<1x8x32xf32>
    %7 = vector.shape_cast %6 : vector<1x8x32xf32> to vector<8x32xf32>
    %8 = arith.truncf %7 : vector<8x32xf32> to vector<8x32xbf16>
    %cst_8 = arith.constant dense<0.000000e+00> : vector<8x128xf32>
    %9 = tpu.matmul %8, %0, %cst_8 {dimension_numbers = #tpu.dot_dimension_numbers<[1], [0], [0], [1], [0, 0, 1, 1], [], []>} : vector<8x32xbf16>, vector<32x128xbf16>, vector<8x128xf32> -> vector<8x128xf32>
    %10 = arith.truncf %3 : vector<8x32xf32> to vector<8x32xbf16>
    %cst_9 = arith.constant dense<0.000000e+00> : vector<8x128xf32>
    %11 = tpu.matmul %10, %1, %cst_9 {dimension_numbers = #tpu.dot_dimension_numbers<[1], [0], [0], [1], [0, 0, 1, 1], [], []>} : vector<8x32xbf16>, vector<32x128xbf16>, vector<8x128xf32> -> vector<8x128xf32>
    %12 = arith.addf %9, %11 : vector<8x128xf32>
    %13 = vector.broadcast %2 : vector<1x128xf32> to vector<8x128xf32>
    %14 = arith.addf %12, %13 : vector<8x128xf32>
    %15 = vector.extract_strided_slice %14 {offsets = [0, 0], sizes = [8, 96], strides = [1, 1]} : vector<8x128xf32> to vector<8x96xf32>
    %16 = arith.negf %15 : vector<8x96xf32>
    %17 = math.exp %16 : vector<8x96xf32>
    %cst_10 = arith.constant 1.000000e+00 : f32
    %18 = vector.broadcast %cst_10 : f32 to vector<8x96xf32>
    %19 = arith.addf %18, %17 : vector<8x96xf32>
    %20 = arith.divf %18, %19 : vector<8x96xf32>
    %21 = vector.extract_strided_slice %14 {offsets = [0, 96], sizes = [8, 32], strides = [1, 1]} : vector<8x128xf32> to vector<8x32xf32>
    %22 = math.tanh %21 : vector<8x32xf32>
    %23 = vector.extract_strided_slice %20 {offsets = [0, 0], sizes = [8, 32], strides = [1, 1]} : vector<8x96xf32> to vector<8x32xf32>
    %24 = vector.extract_strided_slice %20 {offsets = [0, 32], sizes = [8, 32], strides = [1, 1]} : vector<8x96xf32> to vector<8x32xf32>
    %25 = vector.extract_strided_slice %20 {offsets = [0, 64], sizes = [8, 32], strides = [1, 1]} : vector<8x96xf32> to vector<8x32xf32>
    %26 = arith.mulf %24, %4 : vector<8x32xf32>
    %27 = arith.mulf %23, %22 : vector<8x32xf32>
    %28 = arith.addf %26, %27 : vector<8x32xf32>
    %29 = math.tanh %28 : vector<8x32xf32>
    %30 = arith.mulf %25, %29 : vector<8x32xf32>
    %31 = arith.index_cast %c0_i32 : i32 to index
    %c0_11 = arith.constant 0 : index
    %c0_12 = arith.constant 0 : index
    %32 = vector.load %arg4[%31, %c0_11, %c0_12] : memref<8x8x32xf32, #tpu.memory_space<vmem>>, vector<1x8x32xf32>
    %33 = vector.shape_cast %32 : vector<1x8x32xf32> to vector<8x32xf32>
    %34 = vector.shape_cast %30 : vector<8x32xf32> to vector<1x8x32xf32>
    tpu.vector_store %arg4[%31, %c0_11, %c0_12], %34 {strides = array<i32>} : memref<8x8x32xf32, #tpu.memory_space<vmem>>, vector<1x8x32xf32>,
    %c1_i32 = arith.constant 1 : i32
    %35 = arith.index_cast %c1_i32 : i32 to index
    %c0_13 = arith.constant 0 : index
    %c0_14 = arith.constant 0 : index
    %36 = vector.load %arg0[%35, %c0_13, %c0_14] : memref<8x8x32xf32, #tpu.memory_space<vmem>>, vector<1x8x32xf32>
    %37 = vector.shape_cast %36 : vector<1x8x32xf32> to vector<8x32xf32>
    %38 = arith.truncf %37 : vector<8x32xf32> to vector<8x32xbf16>
    %cst_15 = arith.constant dense<0.000000e+00> : vector<8x128xf32>
    %39 = tpu.matmul %38, %0, %cst_15 {dimension_numbers = #tpu.dot_dimension_numbers<[1], [0], [0], [1], [0, 0, 1, 1], [], []>} : vector<8x32xbf16>, vector<32x128xbf16>, vector<8x128xf32> -> vector<8x128xf32>
    %40 = arith.truncf %30 : vector<8x32xf32> to vector<8x32xbf16>
    %cst_16 = arith.constant dense<0.000000e+00> : vector<8x128xf32>
    %41 = tpu.matmul %40, %1, %cst_16 {dimension_numbers = #tpu.dot_dimension_numbers<[1], [0], [0], [1], [0, 0, 1, 1], [], []>} : vector<8x32xbf16>, vector<32x128xbf16>, vector<8x128xf32> -> vector<8x128xf32>
    %42 = arith.addf %39, %41 : vector<8x128xf32>
    %43 = vector.broadcast %2 : vector<1x128xf32> to vector<8x128xf32>
    %44 = arith.addf %42, %43 : vector<8x128xf32>
    %45 = vector.extract_strided_slice %44 {offsets = [0, 0], sizes = [8, 96], strides = [1, 1]} : vector<8x128xf32> to vector<8x96xf32>
    %46 = arith.negf %45 : vector<8x96xf32>
    %47 = math.exp %46 : vector<8x96xf32>
    %cst_17 = arith.constant 1.000000e+00 : f32
    %48 = vector.broadcast %cst_17 : f32 to vector<8x96xf32>
    %49 = arith.addf %48, %47 : vector<8x96xf32>
    %50 = arith.divf %48, %49 : vector<8x96xf32>
    %51 = vector.extract_strided_slice %44 {offsets = [0, 96], sizes = [8, 32], strides = [1, 1]} : vector<8x128xf32> to vector<8x32xf32>
    %52 = math.tanh %51 : vector<8x32xf32>
    %53 = vector.extract_strided_slice %50 {offsets = [0, 0], sizes = [8, 32], strides = [1, 1]} : vector<8x96xf32> to vector<8x32xf32>
    %54 = vector.extract_strided_slice %50 {offsets = [0, 32], sizes = [8, 32], strides = [1, 1]} : vector<8x96xf32> to vector<8x32xf32>
    %55 = vector.extract_strided_slice %50 {offsets = [0, 64], sizes = [8, 32], strides = [1, 1]} : vector<8x96xf32> to vector<8x32xf32>
    %56 = arith.mulf %54, %28 : vector<8x32xf32>
    %57 = arith.mulf %53, %52 : vector<8x32xf32>
    %58 = arith.addf %56, %57 : vector<8x32xf32>
    %59 = math.tanh %58 : vector<8x32xf32>
    %60 = arith.mulf %55, %59 : vector<8x32xf32>
    %61 = arith.index_cast %c1_i32 : i32 to index
    %c0_18 = arith.constant 0 : index
    %c0_19 = arith.constant 0 : index
    %62 = vector.load %arg4[%61, %c0_18, %c0_19] : memref<8x8x32xf32, #tpu.memory_space<vmem>>, vector<1x8x32xf32>
    %63 = vector.shape_cast %62 : vector<1x8x32xf32> to vector<8x32xf32>
    %64 = vector.shape_cast %60 : vector<8x32xf32> to vector<1x8x32xf32>
    tpu.vector_store %arg4[%61, %c0_18, %c0_19], %64 {strides = array<i32>} : memref<8x8x32xf32, #tpu.memory_space<vmem>>, vector<1x8x32xf32>,
    %c2_i32 = arith.constant 2 : i32
    %65 = arith.index_cast %c2_i32 : i32 to index
    %c0_20 = arith.constant 0 : index
    %c0_21 = arith.constant 0 : index
    %66 = vector.load %arg0[%65, %c0_20, %c0_21] : memref<8x8x32xf32, #tpu.memory_space<vmem>>, vector<1x8x32xf32>
    %67 = vector.shape_cast %66 : vector<1x8x32xf32> to vector<8x32xf32>
    %68 = arith.truncf %67 : vector<8x32xf32> to vector<8x32xbf16>
    %cst_22 = arith.constant dense<0.000000e+00> : vector<8x128xf32>
    %69 = tpu.matmul %68, %0, %cst_22 {dimension_numbers = #tpu.dot_dimension_numbers<[1], [0], [0], [1], [0, 0, 1, 1], [], []>} : vector<8x32xbf16>, vector<32x128xbf16>, vector<8x128xf32> -> vector<8x128xf32>
    %70 = arith.truncf %60 : vector<8x32xf32> to vector<8x32xbf16>
    %cst_23 = arith.constant dense<0.000000e+00> : vector<8x128xf32>
    %71 = tpu.matmul %70, %1, %cst_23 {dimension_numbers = #tpu.dot_dimension_numbers<[1], [0], [0], [1], [0, 0, 1, 1], [], []>} : vector<8x32xbf16>, vector<32x128xbf16>, vector<8x128xf32> -> vector<8x128xf32>
    %72 = arith.addf %69, %71 : vector<8x128xf32>
    %73 = vector.broadcast %2 : vector<1x128xf32> to vector<8x128xf32>
    %74 = arith.addf %72, %73 : vector<8x128xf32>
    %75 = vector.extract_strided_slice %74 {offsets = [0, 0], sizes = [8, 96], strides = [1, 1]} : vector<8x128xf32> to vector<8x96xf32>
    %76 = arith.negf %75 : vector<8x96xf32>
    %77 = math.exp %76 : vector<8x96xf32>
    %cst_24 = arith.constant 1.000000e+00 : f32
    %78 = vector.broadcast %cst_24 : f32 to vector<8x96xf32>
    %79 = arith.addf %78, %77 : vector<8x96xf32>
    %80 = arith.divf %78, %79 : vector<8x96xf32>
    %81 = vector.extract_strided_slice %74 {offsets = [0, 96], sizes = [8, 32], strides = [1, 1]} : vector<8x128xf32> to vector<8x32xf32>
    %82 = math.tanh %81 : vector<8x32xf32>
    %83 = vector.extract_strided_slice %80 {offsets = [0, 0], sizes = [8, 32], strides = [1, 1]} : vector<8x96xf32> to vector<8x32xf32>
    %84 = vector.extract_strided_slice %80 {offsets = [0, 32], sizes = [8, 32], strides = [1, 1]} : vector<8x96xf32> to vector<8x32xf32>
    %85 = vector.extract_strided_slice %80 {offsets = [0, 64], sizes = [8, 32], strides = [1, 1]} : vector<8x96xf32> to vector<8x32xf32>
    %86 = arith.mulf %84, %58 : vector<8x32xf32>
    %87 = arith.mulf %83, %82 : vector<8x32xf32>
    %88 = arith.addf %86, %87 : vector<8x32xf32>
    %89 = math.tanh %88 : vector<8x32xf32>
    %90 = arith.mulf %85, %89 : vector<8x32xf32>
    %91 = arith.index_cast %c2_i32 : i32 to index
    %c0_25 = arith.constant 0 : index
    %c0_26 = arith.constant 0 : index
    %92 = vector.load %arg4[%91, %c0_25, %c0_26] : memref<8x8x32xf32, #tpu.memory_space<vmem>>, vector<1x8x32xf32>
    %93 = vector.shape_cast %92 : vector<1x8x32xf32> to vector<8x32xf32>
    %94 = vector.shape_cast %90 : vector<8x32xf32> to vector<1x8x32xf32>
    tpu.vector_store %arg4[%91, %c0_25, %c0_26], %94 {strides = array<i32>} : memref<8x8x32xf32, #tpu.memory_space<vmem>>, vector<1x8x32xf32>,
    %c3_i32 = arith.constant 3 : i32
    %95 = arith.index_cast %c3_i32 : i32 to index
    %c0_27 = arith.constant 0 : index
    %c0_28 = arith.constant 0 : index
    %96 = vector.load %arg0[%95, %c0_27, %c0_28] : memref<8x8x32xf32, #tpu.memory_space<vmem>>, vector<1x8x32xf32>
    %97 = vector.shape_cast %96 : vector<1x8x32xf32> to vector<8x32xf32>
    %98 = arith.truncf %97 : vector<8x32xf32> to vector<8x32xbf16>
    %cst_29 = arith.constant dense<0.000000e+00> : vector<8x128xf32>
    %99 = tpu.matmul %98, %0, %cst_29 {dimension_numbers = #tpu.dot_dimension_numbers<[1], [0], [0], [1], [0, 0, 1, 1], [], []>} : vector<8x32xbf16>, vector<32x128xbf16>, vector<8x128xf32> -> vector<8x128xf32>
    %100 = arith.truncf %90 : vector<8x32xf32> to vector<8x32xbf16>
    %cst_30 = arith.constant dense<0.000000e+00> : vector<8x128xf32>
    %101 = tpu.matmul %100, %1, %cst_30 {dimension_numbers = #tpu.dot_dimension_numbers<[1], [0], [0], [1], [0, 0, 1, 1], [], []>} : vector<8x32xbf16>, vector<32x128xbf16>, vector<8x128xf32> -> vector<8x128xf32>
    %102 = arith.addf %99, %101 : vector<8x128xf32>
    %103 = vector.broadcast %2 : vector<1x128xf32> to vector<8x128xf32>
    %104 = arith.addf %102, %103 : vector<8x128xf32>
    %105 = vector.extract_strided_slice %104 {offsets = [0, 0], sizes = [8, 96], strides = [1, 1]} : vector<8x128xf32> to vector<8x96xf32>
    %106 = arith.negf %105 : vector<8x96xf32>
    %107 = math.exp %106 : vector<8x96xf32>
    %cst_31 = arith.constant 1.000000e+00 : f32
    %108 = vector.broadcast %cst_31 : f32 to vector<8x96xf32>
    %109 = arith.addf %108, %107 : vector<8x96xf32>
    %110 = arith.divf %108, %109 : vector<8x96xf32>
    %111 = vector.extract_strided_slice %104 {offsets = [0, 96], sizes = [8, 32], strides = [1, 1]} : vector<8x128xf32> to vector<8x32xf32>
    %112 = math.tanh %111 : vector<8x32xf32>
    %113 = vector.extract_strided_slice %110 {offsets = [0, 0], sizes = [8, 32], strides = [1, 1]} : vector<8x96xf32> to vector<8x32xf32>
    %114 = vector.extract_strided_slice %110 {offsets = [0, 32], sizes = [8, 32], strides = [1, 1]} : vector<8x96xf32> to vector<8x32xf32>
    %115 = vector.extract_strided_slice %110 {offsets = [0, 64], sizes = [8, 32], strides = [1, 1]} : vector<8x96xf32> to vector<8x32xf32>
    %116 = arith.mulf %114, %88 : vector<8x32xf32>
    %117 = arith.mulf %113, %112 : vector<8x32xf32>
    %118 = arith.addf %116, %117 : vector<8x32xf32>
    %119 = math.tanh %118 : vector<8x32xf32>
    %120 = arith.mulf %115, %119 : vector<8x32xf32>
    %121 = arith.index_cast %c3_i32 : i32 to index
    %c0_32 = arith.constant 0 : index
    %c0_33 = arith.constant 0 : index
    %122 = vector.load %arg4[%121, %c0_32, %c0_33] : memref<8x8x32xf32, #tpu.memory_space<vmem>>, vector<1x8x32xf32>
    %123 = vector.shape_cast %122 : vector<1x8x32xf32> to vector<8x32xf32>
    %124 = vector.shape_cast %120 : vector<8x32xf32> to vector<1x8x32xf32>
    tpu.vector_store %arg4[%121, %c0_32, %c0_33], %124 {strides = array<i32>} : memref<8x8x32xf32, #tpu.memory_space<vmem>>, vector<1x8x32xf32>,
    %c4_i32 = arith.constant 4 : i32
    %125 = arith.index_cast %c4_i32 : i32 to index
    %c0_34 = arith.constant 0 : index
    %c0_35 = arith.constant 0 : index
    %126 = vector.load %arg0[%125, %c0_34, %c0_35] : memref<8x8x32xf32, #tpu.memory_space<vmem>>, vector<1x8x32xf32>
    %127 = vector.shape_cast %126 : vector<1x8x32xf32> to vector<8x32xf32>
    %128 = arith.truncf %127 : vector<8x32xf32> to vector<8x32xbf16>
    %cst_36 = arith.constant dense<0.000000e+00> : vector<8x128xf32>
    %129 = tpu.matmul %128, %0, %cst_36 {dimension_numbers = #tpu.dot_dimension_numbers<[1], [0], [0], [1], [0, 0, 1, 1], [], []>} : vector<8x32xbf16>, vector<32x128xbf16>, vector<8x128xf32> -> vector<8x128xf32>
    %130 = arith.truncf %120 : vector<8x32xf32> to vector<8x32xbf16>
    %cst_37 = arith.constant dense<0.000000e+00> : vector<8x128xf32>
    %131 = tpu.matmul %130, %1, %cst_37 {dimension_numbers = #tpu.dot_dimension_numbers<[1], [0], [0], [1], [0, 0, 1, 1], [], []>} : vector<8x32xbf16>, vector<32x128xbf16>, vector<8x128xf32> -> vector<8x128xf32>
    %132 = arith.addf %129, %131 : vector<8x128xf32>
    %133 = vector.broadcast %2 : vector<1x128xf32> to vector<8x128xf32>
    %134 = arith.addf %132, %133 : vector<8x128xf32>
    %135 = vector.extract_strided_slice %134 {offsets = [0, 0], sizes = [8, 96], strides = [1, 1]} : vector<8x128xf32> to vector<8x96xf32>
    %136 = arith.negf %135 : vector<8x96xf32>
    %137 = math.exp %136 : vector<8x96xf32>
    %cst_38 = arith.constant 1.000000e+00 : f32
    %138 = vector.broadcast %cst_38 : f32 to vector<8x96xf32>
    %139 = arith.addf %138, %137 : vector<8x96xf32>
    %140 = arith.divf %138, %139 : vector<8x96xf32>
    %141 = vector.extract_strided_slice %134 {offsets = [0, 96], sizes = [8, 32], strides = [1, 1]} : vector<8x128xf32> to vector<8x32xf32>
    %142 = math.tanh %141 : vector<8x32xf32>
    %143 = vector.extract_strided_slice %140 {offsets = [0, 0], sizes = [8, 32], strides = [1, 1]} : vector<8x96xf32> to vector<8x32xf32>
    %144 = vector.extract_strided_slice %140 {offsets = [0, 32], sizes = [8, 32], strides = [1, 1]} : vector<8x96xf32> to vector<8x32xf32>
    %145 = vector.extract_strided_slice %140 {offsets = [0, 64], sizes = [8, 32], strides = [1, 1]} : vector<8x96xf32> to vector<8x32xf32>
    %146 = arith.mulf %144, %118 : vector<8x32xf32>
    %147 = arith.mulf %143, %142 : vector<8x32xf32>
    %148 = arith.addf %146, %147 : vector<8x32xf32>
    %149 = math.tanh %148 : vector<8x32xf32>
    %150 = arith.mulf %145, %149 : vector<8x32xf32>
    %151 = arith.index_cast %c4_i32 : i32 to index
    %c0_39 = arith.constant 0 : index
    %c0_40 = arith.constant 0 : index
    %152 = vector.load %arg4[%151, %c0_39, %c0_40] : memref<8x8x32xf32, #tpu.memory_space<vmem>>, vector<1x8x32xf32>
    %153 = vector.shape_cast %152 : vector<1x8x32xf32> to vector<8x32xf32>
    %154 = vector.shape_cast %150 : vector<8x32xf32> to vector<1x8x32xf32>
    tpu.vector_store %arg4[%151, %c0_39, %c0_40], %154 {strides = array<i32>} : memref<8x8x32xf32, #tpu.memory_space<vmem>>, vector<1x8x32xf32>,
    %c5_i32 = arith.constant 5 : i32
    %155 = arith.index_cast %c5_i32 : i32 to index
    %c0_41 = arith.constant 0 : index
    %c0_42 = arith.constant 0 : index
    %156 = vector.load %arg0[%155, %c0_41, %c0_42] : memref<8x8x32xf32, #tpu.memory_space<vmem>>, vector<1x8x32xf32>
    %157 = vector.shape_cast %156 : vector<1x8x32xf32> to vector<8x32xf32>
    %158 = arith.truncf %157 : vector<8x32xf32> to vector<8x32xbf16>
    %cst_43 = arith.constant dense<0.000000e+00> : vector<8x128xf32>
    %159 = tpu.matmul %158, %0, %cst_43 {dimension_numbers = #tpu.dot_dimension_numbers<[1], [0], [0], [1], [0, 0, 1, 1], [], []>} : vector<8x32xbf16>, vector<32x128xbf16>, vector<8x128xf32> -> vector<8x128xf32>
    %160 = arith.truncf %150 : vector<8x32xf32> to vector<8x32xbf16>
    %cst_44 = arith.constant dense<0.000000e+00> : vector<8x128xf32>
    %161 = tpu.matmul %160, %1, %cst_44 {dimension_numbers = #tpu.dot_dimension_numbers<[1], [0], [0], [1], [0, 0, 1, 1], [], []>} : vector<8x32xbf16>, vector<32x128xbf16>, vector<8x128xf32> -> vector<8x128xf32>
    %162 = arith.addf %159, %161 : vector<8x128xf32>
    %163 = vector.broadcast %2 : vector<1x128xf32> to vector<8x128xf32>
    %164 = arith.addf %162, %163 : vector<8x128xf32>
    %165 = vector.extract_strided_slice %164 {offsets = [0, 0], sizes = [8, 96], strides = [1, 1]} : vector<8x128xf32> to vector<8x96xf32>
    %166 = arith.negf %165 : vector<8x96xf32>
    %167 = math.exp %166 : vector<8x96xf32>
    %cst_45 = arith.constant 1.000000e+00 : f32
    %168 = vector.broadcast %cst_45 : f32 to vector<8x96xf32>
    %169 = arith.addf %168, %167 : vector<8x96xf32>
    %170 = arith.divf %168, %169 : vector<8x96xf32>
    %171 = vector.extract_strided_slice %164 {offsets = [0, 96], sizes = [8, 32], strides = [1, 1]} : vector<8x128xf32> to vector<8x32xf32>
    %172 = math.tanh %171 : vector<8x32xf32>
    %173 = vector.extract_strided_slice %170 {offsets = [0, 0], sizes = [8, 32], strides = [1, 1]} : vector<8x96xf32> to vector<8x32xf32>
    %174 = vector.extract_strided_slice %170 {offsets = [0, 32], sizes = [8, 32], strides = [1, 1]} : vector<8x96xf32> to vector<8x32xf32>
    %175 = vector.extract_strided_slice %170 {offsets = [0, 64], sizes = [8, 32], strides = [1, 1]} : vector<8x96xf32> to vector<8x32xf32>
    %176 = arith.mulf %174, %148 : vector<8x32xf32>
    %177 = arith.mulf %173, %172 : vector<8x32xf32>
    %178 = arith.addf %176, %177 : vector<8x32xf32>
    %179 = math.tanh %178 : vector<8x32xf32>
    %180 = arith.mulf %175, %179 : vector<8x32xf32>
    %181 = arith.index_cast %c5_i32 : i32 to index
    %c0_46 = arith.constant 0 : index
    %c0_47 = arith.constant 0 : index
    %182 = vector.load %arg4[%181, %c0_46, %c0_47] : memref<8x8x32xf32, #tpu.memory_space<vmem>>, vector<1x8x32xf32>
    %183 = vector.shape_cast %182 : vector<1x8x32xf32> to vector<8x32xf32>
    %184 = vector.shape_cast %180 : vector<8x32xf32> to vector<1x8x32xf32>
    tpu.vector_store %arg4[%181, %c0_46, %c0_47], %184 {strides = array<i32>} : memref<8x8x32xf32, #tpu.memory_space<vmem>>, vector<1x8x32xf32>,
    %c6_i32 = arith.constant 6 : i32
    %185 = arith.index_cast %c6_i32 : i32 to index
    %c0_48 = arith.constant 0 : index
    %c0_49 = arith.constant 0 : index
    %186 = vector.load %arg0[%185, %c0_48, %c0_49] : memref<8x8x32xf32, #tpu.memory_space<vmem>>, vector<1x8x32xf32>
    %187 = vector.shape_cast %186 : vector<1x8x32xf32> to vector<8x32xf32>
    %188 = arith.truncf %187 : vector<8x32xf32> to vector<8x32xbf16>
    %cst_50 = arith.constant dense<0.000000e+00> : vector<8x128xf32>
    %189 = tpu.matmul %188, %0, %cst_50 {dimension_numbers = #tpu.dot_dimension_numbers<[1], [0], [0], [1], [0, 0, 1, 1], [], []>} : vector<8x32xbf16>, vector<32x128xbf16>, vector<8x128xf32> -> vector<8x128xf32>
    %190 = arith.truncf %180 : vector<8x32xf32> to vector<8x32xbf16>
    %cst_51 = arith.constant dense<0.000000e+00> : vector<8x128xf32>
    %191 = tpu.matmul %190, %1, %cst_51 {dimension_numbers = #tpu.dot_dimension_numbers<[1], [0], [0], [1], [0, 0, 1, 1], [], []>} : vector<8x32xbf16>, vector<32x128xbf16>, vector<8x128xf32> -> vector<8x128xf32>
    %192 = arith.addf %189, %191 : vector<8x128xf32>
    %193 = vector.broadcast %2 : vector<1x128xf32> to vector<8x128xf32>
    %194 = arith.addf %192, %193 : vector<8x128xf32>
    %195 = vector.extract_strided_slice %194 {offsets = [0, 0], sizes = [8, 96], strides = [1, 1]} : vector<8x128xf32> to vector<8x96xf32>
    %196 = arith.negf %195 : vector<8x96xf32>
    %197 = math.exp %196 : vector<8x96xf32>
    %cst_52 = arith.constant 1.000000e+00 : f32
    %198 = vector.broadcast %cst_52 : f32 to vector<8x96xf32>
    %199 = arith.addf %198, %197 : vector<8x96xf32>
    %200 = arith.divf %198, %199 : vector<8x96xf32>
    %201 = vector.extract_strided_slice %194 {offsets = [0, 96], sizes = [8, 32], strides = [1, 1]} : vector<8x128xf32> to vector<8x32xf32>
    %202 = math.tanh %201 : vector<8x32xf32>
    %203 = vector.extract_strided_slice %200 {offsets = [0, 0], sizes = [8, 32], strides = [1, 1]} : vector<8x96xf32> to vector<8x32xf32>
    %204 = vector.extract_strided_slice %200 {offsets = [0, 32], sizes = [8, 32], strides = [1, 1]} : vector<8x96xf32> to vector<8x32xf32>
    %205 = vector.extract_strided_slice %200 {offsets = [0, 64], sizes = [8, 32], strides = [1, 1]} : vector<8x96xf32> to vector<8x32xf32>
    %206 = arith.mulf %204, %178 : vector<8x32xf32>
    %207 = arith.mulf %203, %202 : vector<8x32xf32>
    %208 = arith.addf %206, %207 : vector<8x32xf32>
    %209 = math.tanh %208 : vector<8x32xf32>
    %210 = arith.mulf %205, %209 : vector<8x32xf32>
    %211 = arith.index_cast %c6_i32 : i32 to index
    %c0_53 = arith.constant 0 : index
    %c0_54 = arith.constant 0 : index
    %212 = vector.load %arg4[%211, %c0_53, %c0_54] : memref<8x8x32xf32, #tpu.memory_space<vmem>>, vector<1x8x32xf32>
    %213 = vector.shape_cast %212 : vector<1x8x32xf32> to vector<8x32xf32>
    %214 = vector.shape_cast %210 : vector<8x32xf32> to vector<1x8x32xf32>
    tpu.vector_store %arg4[%211, %c0_53, %c0_54], %214 {strides = array<i32>} : memref<8x8x32xf32, #tpu.memory_space<vmem>>, vector<1x8x32xf32>,
    %c7_i32 = arith.constant 7 : i32
    %215 = arith.index_cast %c7_i32 : i32 to index
    %c0_55 = arith.constant 0 : index
    %c0_56 = arith.constant 0 : index
    %216 = vector.load %arg0[%215, %c0_55, %c0_56] : memref<8x8x32xf32, #tpu.memory_space<vmem>>, vector<1x8x32xf32>
    %217 = vector.shape_cast %216 : vector<1x8x32xf32> to vector<8x32xf32>
    %218 = arith.truncf %217 : vector<8x32xf32> to vector<8x32xbf16>
    %cst_57 = arith.constant dense<0.000000e+00> : vector<8x128xf32>
    %219 = tpu.matmul %218, %0, %cst_57 {dimension_numbers = #tpu.dot_dimension_numbers<[1], [0], [0], [1], [0, 0, 1, 1], [], []>} : vector<8x32xbf16>, vector<32x128xbf16>, vector<8x128xf32> -> vector<8x128xf32>
    %220 = arith.truncf %210 : vector<8x32xf32> to vector<8x32xbf16>
    %cst_58 = arith.constant dense<0.000000e+00> : vector<8x128xf32>
    %221 = tpu.matmul %220, %1, %cst_58 {dimension_numbers = #tpu.dot_dimension_numbers<[1], [0], [0], [1], [0, 0, 1, 1], [], []>} : vector<8x32xbf16>, vector<32x128xbf16>, vector<8x128xf32> -> vector<8x128xf32>
    %222 = arith.addf %219, %221 : vector<8x128xf32>
    %223 = vector.broadcast %2 : vector<1x128xf32> to vector<8x128xf32>
    %224 = arith.addf %222, %223 : vector<8x128xf32>
    %225 = vector.extract_strided_slice %224 {offsets = [0, 0], sizes = [8, 96], strides = [1, 1]} : vector<8x128xf32> to vector<8x96xf32>
    %226 = arith.negf %225 : vector<8x96xf32>
    %227 = math.exp %226 : vector<8x96xf32>
    %cst_59 = arith.constant 1.000000e+00 : f32
    %228 = vector.broadcast %cst_59 : f32 to vector<8x96xf32>
    %229 = arith.addf %228, %227 : vector<8x96xf32>
    %230 = arith.divf %228, %229 : vector<8x96xf32>
    %231 = vector.extract_strided_slice %224 {offsets = [0, 96], sizes = [8, 32], strides = [1, 1]} : vector<8x128xf32> to vector<8x32xf32>
    %232 = math.tanh %231 : vector<8x32xf32>
    %233 = vector.extract_strided_slice %230 {offsets = [0, 0], sizes = [8, 32], strides = [1, 1]} : vector<8x96xf32> to vector<8x32xf32>
    %234 = vector.extract_strided_slice %230 {offsets = [0, 32], sizes = [8, 32], strides = [1, 1]} : vector<8x96xf32> to vector<8x32xf32>
    %235 = vector.extract_strided_slice %230 {offsets = [0, 64], sizes = [8, 32], strides = [1, 1]} : vector<8x96xf32> to vector<8x32xf32>
    %236 = arith.mulf %234, %208 : vector<8x32xf32>
    %237 = arith.mulf %233, %232 : vector<8x32xf32>
    %238 = arith.addf %236, %237 : vector<8x32xf32>
    %239 = math.tanh %238 : vector<8x32xf32>
    %240 = arith.mulf %235, %239 : vector<8x32xf32>
    %241 = arith.index_cast %c7_i32 : i32 to index
    %c0_60 = arith.constant 0 : index
    %c0_61 = arith.constant 0 : index
    %242 = vector.load %arg4[%241, %c0_60, %c0_61] : memref<8x8x32xf32, #tpu.memory_space<vmem>>, vector<1x8x32xf32>
    %243 = vector.shape_cast %242 : vector<1x8x32xf32> to vector<8x32xf32>
    %244 = vector.shape_cast %240 : vector<8x32xf32> to vector<1x8x32xf32>
    tpu.vector_store %arg4[%241, %c0_60, %c0_61], %244 {strides = array<i32>} : memref<8x8x32xf32, #tpu.memory_space<vmem>>, vector<1x8x32xf32>,
    %c8_i32 = arith.constant 8 : i32
    return
  }
}

</mosaic_0001>

<bundles_post_ra>
// kernel: tpu_custom_call.1
= control target key start
LH: loop header
LB: loop body
LE: loop exit
PB: predicated region body
PF: predicated region fallthrough
CT: control target
= control target key end

     0   :  { %9 = vsyncpa [#allocation3], 0  ;;  %s1788_s0 = inlined_call_operand.hbm [shape: f32[8,8,32], index: 0, kind: input, shape index: {}]   ;;  %s1789_s1 = inlined_call_operand.hbm [shape: bf16[32,128], index: 1, kind: input, shape index: {}]   ;;  %s1790_s2 = inlined_call_operand.hbm [shape: bf16[32,128], index: 2, kind: input, shape index: {}]   ;;  %s1791_s3 = inlined_call_operand.vmem [shape: f32[1,128], index: 3, kind: input, shape index: {}]   ;;  %s1792_s4 = inlined_call_operand.hbm [shape: f32[8,8,32], index: 4, kind: output, shape index: {}]  }
   0x1   :  { %10 = vsyncpa [#allocation6], 0 }
   0x2   :  { %11 = vsyncpa [#allocation4], 0  ;;  %s1482_s15 = smov [#allocation5]   ;;  %s1388_s19 = scalar_lea.hbm %s1789_s1, 256 }
   0x3   :  { %s29_s16 = sshll.u32 %s1482_s15, 4  ;;  %p1389_p0 = scmp.ne.s32.totalorder %s1789_s1, %s1388_s19  ;;  %s30_s16 = int_to_ptr.vmem [resolvable:$true] %s29_s16 }
   0x4   :  { %p1392_p1 = scmp.lt.u32.totalorder %s1388_s19, %s1789_s1 }
   0x6   :  { %p1394_p2 = pnand %p1392_p1, %p1389_p0 }
   0x8   :  { %1397 = shalt.err (!%p1394_p2)
}
   0x9   :  { %s1398_s24 = scalar_lea.vmem %s30_s16, 256  ;;  %p1403_p4 = scmp.lt.s32.totalorder %s30_s16, %s30_s16 }
   0xa   :  { %p1399_p3 = scmp.ne.s32.totalorder %s30_s16, %s1398_s24  ;;  %p1404_p5 = scmp.lt.s32.totalorder %s1398_s24, %s1398_s24 }
   0xc   :  { %p1405_p6 = por %p1404_p5, %p1403_p4 }
   0xe   :  { %p1406_p7 = pnand %p1405_p6, %p1399_p3 }
  0x10   :  { %1409 = shalt.err (!%p1406_p7)
}
  0x11   :  { %s1483_s25 = smov 64   ;;  %s1484_s26 = smov 4  }
  0x12   :  { %35 = dma.hbm_to_vmem [thread:$0]  %s1789_s1, 256, %s30_s16, [#allocation6], %s1483_s25, %s1483_s25, %s1484_s26  }
  0x13   :  { %s1485_s29 = smov [#allocation2]   ;;  %s1410_s7 = scalar_lea.hbm %s1788_s0, 1024 }
  0x14   :  { %s17_s30 = sshll.u32 %s1485_s29, 4  ;;  %p1411_p8 = scmp.ne.s32.totalorder %s1788_s0, %s1410_s7  ;;  %s18_s30 = int_to_ptr.vmem [resolvable:$true] %s17_s30 }
  0x15   :  { %p1414_p9 = scmp.lt.u32.totalorder %s1410_s7, %s1788_s0 }
  0x17   :  { %p1416_p10 = pnand %p1414_p9, %p1411_p8 }
  0x19   :  { %1419 = shalt.err (!%p1416_p10)
}
  0x1a   :  { %s1420_s12 = scalar_lea.vmem %s18_s30, 1024  ;;  %p1425_p12 = scmp.lt.s32.totalorder %s18_s30, %s18_s30 }
  0x1b   :  { %p1421_p11 = scmp.ne.s32.totalorder %s18_s30, %s1420_s12  ;;  %p1426_p13 = scmp.lt.s32.totalorder %s1420_s12, %s1420_s12 }
  0x1d   :  { %p1427_p0 = por %p1426_p13, %p1425_p12 }
  0x1f   :  { %p1428_p1 = pnand %p1427_p0, %p1421_p11 }
  0x21   :  { %1431 = shalt.err (!%p1428_p1)
}
  0x22   :  { %s1486_s1 = smov 128   ;;  %s1487_s13 = smov 8  }
  0x23   :  { %23 = dma.hbm_to_vmem [thread:$0]  %s1788_s0, 1024, %s18_s30, [#allocation3], %s1486_s1, %s1486_s1, %s1487_s13  }
  0x24   :  { %s1488_s16 = smov [#allocation7]   ;;  %s1432_s20 = scalar_lea.hbm %s1790_s2, 256 }
  0x25   :  { %s41_s17 = sshll.u32 %s1488_s16, 4  ;;  %p1433_p2 = scmp.ne.s32.totalorder %s1790_s2, %s1432_s20  ;;  %s42_s17 = int_to_ptr.vmem [resolvable:$true] %s41_s17 }
  0x26   :  { %p1436_p3 = scmp.lt.u32.totalorder %s1432_s20, %s1790_s2 }
  0x28   :  { %p1438_p4 = pnand %p1436_p3, %p1433_p2 }
  0x2a   :  { %1441 = shalt.err (!%p1438_p4)
}
  0x2b   :  { %s1442_s27 = scalar_lea.vmem %s42_s17, 256  ;;  %p1447_p6 = scmp.lt.s32.totalorder %s42_s17, %s42_s17 }
  0x2c   :  { %p1443_p5 = scmp.ne.s32.totalorder %s42_s17, %s1442_s27  ;;  %p1448_p7 = scmp.lt.s32.totalorder %s1442_s27, %s1442_s27 }
  0x2e   :  { %p1449_p8 = por %p1448_p7, %p1447_p6 }
  0x30   :  { %p1450_p9 = pnand %p1449_p8, %p1443_p5 }
  0x32   :  { %1453 = shalt.err (!%p1450_p9)
}
  0x33   :  { %47 = dma.hbm_to_vmem [thread:$0]  %s1790_s2, 256, %s42_s17, [#allocation6], %s1483_s25, %s1483_s25, %s1484_s26  }
  0x34   :  { %1476 = dma.done.wait [#allocation3], 1024  }
  0x35   :  { %1477 = vsyncadd [#allocation3], 4294966272 }
  0x36   :  { %1478 = dma.done.wait [#allocation6], 512  }
  0x37   :  { %1479 = vsyncadd [#allocation6], 4294966784  ;;  %v1489_v0 = vmov 0.0   ;;  %vm1490_vm0 = vmmov 0   ;;  %v1570_v1 = vld [vmem:[#allocation7] sm:$0xff]   ;;  %v1572_v2 = vld [vmem:[#allocation5] sm:$0xff]  }
  0x38   :  { %1180 = vmatprep.subr.bf16.mxu0 %v1489_v0  ;;  %1188 = vmatprep.subr.bf16.mxu1 %v1489_v0  ;;  %v1575_v3 = vld [vmem:[#allocation7 + $0x8] sm:$0xff]   ;;  %v1579_v4 = vld [vmem:[#allocation5 + $0x8] sm:$0xff]   ;;  %v69_v5 = vld [vmem:[#allocation2] sm:$0xff]  ;;  %vm83_vm1 = vcmask 261120   ;;  %v1491_v7 = vmov 0   ;;  %s1492_s29 = smov 32  }
  0x39   :  { %1184 = vmatprep.mubr.msk.bf16.mxu0 %vm1490_vm0, %v1489_v0  ;;  %1192 = vmatprep.mubr.msk.bf16.mxu1 %vm1490_vm0, %v1489_v0  ;;  %v70_v6 = vpack.c.bf16 %v69_v5, %v69_v5  ;;  %v1602_v9 = vld [vmem:[%s1791_s3] ss:$0 sm:$0xff]  ;;  %v219_v29 = vld [vmem:[#allocation2 + $0x8] sm:$0xff]  ;;  %v343_v56 = vld [vmem:[#allocation2 + $0x10] sm:$0xff]  ;;  %s1493_s3 = smov [#allocation8]  }
  0x3a   :  { %1181 = vmatpush3.bf16.msra.mxu0 %v1570_v1  ;;  %1189 = vmatpush3.bf16.msra.mxu1 %v1572_v2  ;;  %v220_v30 = vpack.c.bf16 %v219_v29, %v219_v29  ;;  %v344_v57 = vpack.c.bf16 %v343_v56, %v343_v56  ;;  %s1091_s30 = sshll.u32 %s1493_s3, 4  ;;  %s1092_s30 = int_to_ptr.vmem [resolvable:$true] %s1091_s30 }
  0x3b   :  { %1182 = vmatprep.subr.bf16.mxu0 %v1489_v0  ;;  %1190 = vmatprep.subr.bf16.mxu1 %v1489_v0  ;;  %s1454_s5 = scalar_lea.vmem %s1092_s30, 1024  ;;  %p1459_p11 = scmp.lt.s32.totalorder %s1092_s30, %s1092_s30 }
  0x3c   :  { %p1455_p10 = scmp.ne.s32.totalorder %s1092_s30, %s1454_s5  ;;  %p1460_p12 = scmp.lt.s32.totalorder %s1454_s5, %s1454_s5 }
  0x3e   :  { %1183 = vmatpush3.bf16.msra.mxu0 %v1575_v3  ;;  %1191 = vmatpush3.bf16.msra.mxu1 %v1579_v4  ;;  %p1461_p13 = por %p1460_p12, %p1459_p11 }
  0x3f   :  { %1196 = vmatprep.subr.bf16.mxu0 %v1489_v0  ;;  %1204 = vmatprep.subr.bf16.mxu1 %v1489_v0 }
  0x40   :  { %p1462_p0 = pnand %p1461_p13, %p1455_p10 }
  0x41   :  { %1185 = vmatmul.mubr.bf16.vlgmr.msra.gmra.mrb[0].mxu0 %v1491_v7  ;;  %1193 = vmatmul.mubr.msk.bf16.vlgmr.msra.gmra.mrb[0].mxu1 %vm83_vm1, %v70_v6 }
  0x42   :  { %1197 = vmatpush3.bf16.msra.mxu0 %v1570_v1  ;;  %1205 = vmatpush3.bf16.msra.mxu1 %v1572_v2 }
  0x43   :  { %1198 = vmatprep.subr.bf16.mxu0 %v1489_v0  ;;  %1206 = vmatprep.subr.bf16.mxu1 %v1489_v0 }
  0x44   :  { %1208 = vmatprep.mubr.msk.bf16.mxu1 %vm1490_vm0, %v1489_v0  ;;  %1200 = vmatprep.mubr.msk.bf16.mxu0 %vm1490_vm0, %v1489_v0 }
  0x46   :  { %1199 = vmatpush3.bf16.msra.mxu0 %v1575_v3  ;;  %1207 = vmatpush3.bf16.msra.mxu1 %v1579_v4 }
  0x47   :  { %1212 = vmatprep.subr.bf16.mxu0 %v1489_v0  ;;  %1220 = vmatprep.subr.bf16.mxu1 %v1489_v0 }
  0x49   :  { %1209 = vmatmul.mubr.msk.bf16.vlgmr.msra.gmra.mrb[4].mxu1 %vm83_vm1, %v220_v30 }
  0x4a   :  { %1221 = vmatpush3.bf16.msra.mxu1 %v1572_v2  ;;  %1224 = vmatprep.mubr.msk.bf16.mxu1 %vm1490_vm0, %v1489_v0 }
  0x4b   :  { %1222 = vmatprep.subr.bf16.mxu1 %v1489_v0 }
  0x4e   :  { %1223 = vmatpush3.bf16.msra.mxu1 %v1579_v4 }
  0x4f   :  { %1236 = vmatprep.subr.bf16.mxu1 %v1489_v0 }
  0x51   :  { %1225 = vmatmul.mubr.msk.bf16.vlgmr.msra.gmra.mrb[8].mxu1 %vm83_vm1, %v344_v57 }
  0x52   :  { %1237 = vmatpush3.bf16.msra.mxu1 %v1572_v2  ;;  %1240 = vmatprep.mubr.msk.bf16.mxu1 %vm1490_vm0, %v1489_v0 }
  0x53   :  { %1238 = vmatprep.subr.bf16.mxu1 %v1489_v0 }
  0x56   :  { %1239 = vmatpush3.bf16.msra.mxu1 %v1579_v4 }
  0x57   :  { %1252 = vmatprep.subr.bf16.mxu1 %v1489_v0 }
 0x114   :  { %v121_v8 = vpop.f32.mrb[0].mxu0  ;;  %v176_v10 = vpop.f32.mrb[0].mxu1 }
 0x115   :  { %v1186_v11 = vpop.f32.mrb[1].mxu0  ;;  %v177_v12 = vadd.f32 %v176_v10, %v121_v8  ;;  %v1194_v13 = vpop.f32.mrb[1].mxu1 }
 0x116   :  { %v124_v14 = vpop.f32.mrb[2].mxu0  ;;  %v179_v15 = vpop.f32.mrb[2].mxu1 }
 0x117   :  { %v1187_v16 = vpop.f32.mrb[3].mxu0  ;;  %v188_v17 = vadd.f32 %v1602_v9, %v177_v12  ;;  %v1195_v18 = vpop.f32.mrb[3].mxu1 }
 0x119   :  { %1324 = vtanh.f32 %v188_v17  ;;  %v1110_v20 = vmul.f32 -1.442695, %v188_v17 }
 0x11b   :  { %1326 = vpow2.f32 %v1110_v20 }
 0x11c   :  { %v305_v35 = vpop.f32.mrb[4].mxu1 }
 0x11d   :  { %v1210_v36 = vpop.f32.mrb[5].mxu1 }
 0x11e   :  { %v308_v37 = vpop.f32.mrb[6].mxu1 }
 0x11f   :  { %v1211_v38 = vpop.f32.mrb[7].mxu1 }
 0x123   :  { %v1325_v19 = vpop.eup %1324 }
 0x124   :  { %198 = vrot.lane.b32.xlu0 %v1325_v19, %s1492_s29  ;;  %v429_v62 = vpop.f32.mrb[8].mxu1 }
 0x125   :  { %v1327_v21 = vpop.eup %1326  ;;  %v1226_v63 = vpop.f32.mrb[9].mxu1 }
 0x126   :  { %v192_v22 = vadd.f32 1.0, %v1327_v21  ;;  %v432_v5 = vpop.f32.mrb[10].mxu1 }
 0x127   :  { %v1227_v6 = vpop.f32.mrb[11].mxu1 }
 0x128   :  { %1328 = vrcp.f32 %v192_v22 }
 0x132   :  { %v1329_v23 = vpop.eup %1328 }
 0x133   :  { %v196_v26 = vmul.f32 0.0, %v1329_v23 }
 0x196   :  { %v199_v24 = vpop.permute.xlu0 %198 }
 0x197   :  { %v201_v25 = vmul.f32 %v1329_v23, %v199_v24 }
 0x199   :  { %203 = vrot.lane.b32.xlu0 %v201_v25, %s1492_s29  ;;  %v467_v25 = vld [vmem:[#allocation2 + $0x18] sm:$0xff] }
 0x20b   :  { %v204_v27 = vpop.permute.xlu0 %203 }
 0x20c   :  { %v206_v28 = vadd.f32 %v204_v27, %v196_v26  ;;  %v468_v26 = vpack.c.bf16 %v467_v25, %v467_v25 }
 0x20e   :  { %1330 = vtanh.f32 %v206_v28  ;;  %1241 = vmatmul.mubr.msk.bf16.vlgmr.msra.gmra.mrb[12].mxu1 %vm83_vm1, %v468_v26 }
 0x20f   :  { %1253 = vmatpush3.bf16.msra.mxu1 %v1572_v2  ;;  %1256 = vmatprep.mubr.msk.bf16.mxu1 %vm1490_vm0, %v1489_v0 }
 0x210   :  { %1254 = vmatprep.subr.bf16.mxu1 %v1489_v0 }
 0x213   :  { %1255 = vmatpush3.bf16.msra.mxu1 %v1579_v4 }
 0x214   :  { %1268 = vmatprep.subr.bf16.mxu1 %v1489_v0 }
 0x218   :  { %v1331_v31 = vpop.eup %1330 }
 0x219   :  { %209 = vrot.lane.b32.xlu1 %v1331_v31, %s1492_s29 }
 0x28b   :  { %v210_v32 = vpop.permute.xlu1 %209 }
 0x28c   :  { %v1615_v33 = vmul.f32 %v1329_v23, %v210_v32 }
 0x28e   :  { %v221_v34 = vpack.c.bf16 %v1615_v33, %v1615_v33 }
 0x290   :  { %223 = vrot.lane.b32.xlu1 %v221_v34, %s1483_s25 }
 0x2e1   :  { %v553_v31 = vpop.f32.mrb[12].mxu1 }
 0x2e2   :  { %v1242_v32 = vpop.f32.mrb[13].mxu1 }
 0x2e3   :  { %v556_v34 = vpop.f32.mrb[14].mxu1 }
 0x302   :  { %v224_v39 = vpop.permute.xlu1 %223 }
 0x303   :  { %1201 = vmatmul.mubr.msk.bf16.vlgmr.msra.gmra.mrb[4].mxu0 %vm83_vm1, %v224_v39 }
 0x304   :  { %1213 = vmatpush3.bf16.msra.mxu0 %v1570_v1  ;;  %1216 = vmatprep.mubr.msk.bf16.mxu0 %vm1490_vm0, %v1489_v0 }
 0x305   :  { %1214 = vmatprep.subr.bf16.mxu0 %v1489_v0 }
 0x308   :  { %1215 = vmatpush3.bf16.msra.mxu0 %v1575_v3 }
 0x309   :  { %1228 = vmatprep.subr.bf16.mxu0 %v1489_v0 }
 0x3d6   :  { %v262_v40 = vpop.f32.mrb[4].mxu0 }
 0x3d7   :  { %v306_v41 = vadd.f32 %v305_v35, %v262_v40  ;;  %v1202_v42 = vpop.f32.mrb[5].mxu0  ;;  %v1243_v35 = vpop.f32.mrb[15].mxu1 }
 0x3d8   :  { %v265_v43 = vpop.f32.mrb[6].mxu0 }
 0x3d9   :  { %v311_v44 = vadd.f32 %v1602_v9, %v306_v41  ;;  %v1203_v45 = vpop.f32.mrb[7].mxu0 }
 0x3db   :  { %1332 = vtanh.f32 %v311_v44  ;;  %v1113_v47 = vmul.f32 -1.442695, %v311_v44 }
 0x3dd   :  { %1334 = vpow2.f32 %v1113_v47 }
 0x3e5   :  { %v1333_v46 = vpop.eup %1332 }
 0x3e6   :  { %321 = vrot.lane.b32.xlu0 %v1333_v46, %s1492_s29 }
 0x3e7   :  { %v1335_v48 = vpop.eup %1334 }
 0x3e8   :  { %v315_v49 = vadd.f32 1.0, %v1335_v48 }
 0x3ea   :  { %1336 = vrcp.f32 %v315_v49 }
 0x3f4   :  { %v1337_v50 = vpop.eup %1336 }
 0x3f5   :  { %v319_v53 = vmul.f32 %v1337_v50, %v206_v28 }
 0x458   :  { %v322_v51 = vpop.permute.xlu0 %321 }
 0x459   :  { %v324_v52 = vmul.f32 %v1337_v50, %v322_v51 }
 0x45b   :  { %326 = vrot.lane.b32.xlu1 %v324_v52, %s1492_s29 }
 0x4cd   :  { %v327_v54 = vpop.permute.xlu1 %326 }
 0x4ce   :  { %v329_v55 = vadd.f32 %v327_v54, %v319_v53  ;;  %v591_v53 = vld [vmem:[#allocation2 + $0x20] sm:$0xff] }
 0x4cf   :  { %v592_v54 = vpack.c.bf16 %v591_v53, %v591_v53 }
 0x4d0   :  { %1338 = vtanh.f32 %v329_v55 }
 0x4d1   :  { %1257 = vmatmul.mubr.msk.bf16.vlgmr.msra.gmra.mrb[16].mxu1 %vm83_vm1, %v592_v54 }
 0x4d2   :  { %1269 = vmatpush3.bf16.msra.mxu1 %v1572_v2  ;;  %1272 = vmatprep.mubr.msk.bf16.mxu1 %vm1490_vm0, %v1489_v0 }
 0x4d3   :  { %1270 = vmatprep.subr.bf16.mxu1 %v1489_v0 }
 0x4d6   :  { %1271 = vmatpush3.bf16.msra.mxu1 %v1579_v4 }
 0x4d7   :  { %1284 = vmatprep.subr.bf16.mxu1 %v1489_v0 }
 0x4da   :  { %v1339_v58 = vpop.eup %1338 }
 0x4db   :  { %332 = vrot.lane.b32.xlu0 %v1339_v58, %s1492_s29 }
 0x54d   :  { %v333_v59 = vpop.permute.xlu0 %332 }
 0x54e   :  { %v1638_v60 = vmul.f32 %v1337_v50, %v333_v59 }
 0x550   :  { %v345_v61 = vpack.c.bf16 %v1638_v60, %v1638_v60 }
 0x552   :  { %347 = vrot.lane.b32.xlu1 %v345_v61, %s1483_s25 }
 0x5a4   :  { %v677_v59 = vpop.f32.mrb[16].mxu1 }
 0x5a5   :  { %v1258_v61 = vpop.f32.mrb[17].mxu1 }
 0x5c4   :  { %v348_v7 = vpop.permute.xlu1 %347 }
 0x5c5   :  { %1217 = vmatmul.mubr.msk.bf16.vlgmr.msra.gmra.mrb[8].mxu0 %vm83_vm1, %v348_v7 }
 0x5c6   :  { %1229 = vmatpush3.bf16.msra.mxu0 %v1570_v1  ;;  %1232 = vmatprep.mubr.msk.bf16.mxu0 %vm1490_vm0, %v1489_v0 }
 0x5c7   :  { %1230 = vmatprep.subr.bf16.mxu0 %v1489_v0 }
 0x5ca   :  { %1231 = vmatpush3.bf16.msra.mxu0 %v1575_v3 }
 0x5cb   :  { %1244 = vmatprep.subr.bf16.mxu0 %v1489_v0 }
 0x698   :  { %v386_v8 = vpop.f32.mrb[8].mxu0 }
 0x699   :  { %v430_v10 = vadd.f32 %v429_v62, %v386_v8  ;;  %v1218_v11 = vpop.f32.mrb[9].mxu0  ;;  %v680_v62 = vpop.f32.mrb[18].mxu1 }
 0x69a   :  { %v389_v12 = vpop.f32.mrb[10].mxu0  ;;  %v1259_v63 = vpop.f32.mrb[19].mxu1 }
 0x69b   :  { %v435_v13 = vadd.f32 %v1602_v9, %v430_v10  ;;  %v1219_v14 = vpop.f32.mrb[11].mxu0 }
 0x69d   :  { %1340 = vtanh.f32 %v435_v13  ;;  %v1116_v16 = vmul.f32 -1.442695, %v435_v13 }
 0x69f   :  { %1342 = vpow2.f32 %v1116_v16 }
 0x6a7   :  { %v1341_v15 = vpop.eup %1340 }
 0x6a8   :  { %445 = vrot.lane.b32.xlu0 %v1341_v15, %s1492_s29 }
 0x6a9   :  { %v1343_v17 = vpop.eup %1342 }
 0x6aa   :  { %v439_v18 = vadd.f32 1.0, %v1343_v17 }
 0x6ac   :  { %1344 = vrcp.f32 %v439_v18 }
 0x6b6   :  { %v1345_v19 = vpop.eup %1344 }
 0x6b7   :  { %v443_v22 = vmul.f32 %v1345_v19, %v329_v55 }
 0x71a   :  { %v446_v20 = vpop.permute.xlu0 %445 }
 0x71b   :  { %v448_v21 = vmul.f32 %v1345_v19, %v446_v20 }
 0x71d   :  { %450 = vrot.lane.b32.xlu1 %v448_v21, %s1492_s29 }
 0x78f   :  { %v451_v23 = vpop.permute.xlu1 %450 }
 0x790   :  { %v453_v24 = vadd.f32 %v451_v23, %v443_v22  ;;  %v715_v23 = vld [vmem:[#allocation2 + $0x28] sm:$0xff] }
 0x792   :  { %1346 = vtanh.f32 %v453_v24 }
 0x79c   :  { %v1347_v27 = vpop.eup %1346 }
 0x79d   :  { %456 = vrot.lane.b32.xlu0 %v1347_v27, %s1492_s29 }
 0x80f   :  { %v457_v28 = vpop.permute.xlu0 %456 }
 0x810   :  { %v1661_v29 = vmul.f32 %v1345_v19, %v457_v28 }
 0x812   :  { %v469_v30 = vpack.c.bf16 %v1661_v29, %v1661_v29 }
 0x814   :  { %471 = vrot.lane.b32.xlu1 %v469_v30, %s1483_s25 }
 0x886   :  { %v472_v36 = vpop.permute.xlu1 %471 }
 0x887   :  { %1233 = vmatmul.mubr.msk.bf16.vlgmr.msra.gmra.mrb[12].mxu0 %vm83_vm1, %v472_v36 }
 0x888   :  { %1245 = vmatpush3.bf16.msra.mxu0 %v1570_v1  ;;  %1248 = vmatprep.mubr.msk.bf16.mxu0 %vm1490_vm0, %v1489_v0 }
 0x889   :  { %1246 = vmatprep.subr.bf16.mxu0 %v1489_v0 }
 0x88c   :  { %1247 = vmatpush3.bf16.msra.mxu0 %v1575_v3 }
 0x88d   :  { %1260 = vmatprep.subr.bf16.mxu0 %v1489_v0 }
 0x95a   :  { %v510_v37 = vpop.f32.mrb[12].mxu0 }
 0x95b   :  { %v554_v38 = vadd.f32 %v553_v31, %v510_v37  ;;  %v1234_v39 = vpop.f32.mrb[13].mxu0 }
 0x95c   :  { %v513_v40 = vpop.f32.mrb[14].mxu0 }
 0x95d   :  { %v559_v41 = vadd.f32 %v1602_v9, %v554_v38  ;;  %v1235_v42 = vpop.f32.mrb[15].mxu0 }
 0x95f   :  { %1348 = vtanh.f32 %v559_v41  ;;  %v1119_v44 = vmul.f32 -1.442695, %v559_v41 }
 0x961   :  { %1350 = vpow2.f32 %v1119_v44 }
 0x969   :  { %v1349_v43 = vpop.eup %1348 }
 0x96a   :  { %569 = vrot.lane.b32.xlu0 %v1349_v43, %s1492_s29 }
 0x96b   :  { %v1351_v45 = vpop.eup %1350 }
 0x96c   :  { %v563_v46 = vadd.f32 1.0, %v1351_v45 }
 0x96e   :  { %1352 = vrcp.f32 %v563_v46 }
 0x978   :  { %v1353_v47 = vpop.eup %1352 }
 0x979   :  { %v567_v50 = vmul.f32 %v1353_v47, %v453_v24  ;;  %v716_v24 = vpack.c.bf16 %v715_v23, %v715_v23 }
 0x97b   :  { %1273 = vmatmul.mubr.msk.bf16.vlgmr.msra.gmra.mrb[20].mxu1 %vm83_vm1, %v716_v24 }
 0x97c   :  { %1285 = vmatpush3.bf16.msra.mxu1 %v1572_v2  ;;  %1288 = vmatprep.mubr.msk.bf16.mxu1 %vm1490_vm0, %v1489_v0 }
 0x97d   :  { %1286 = vmatprep.subr.bf16.mxu1 %v1489_v0 }
 0x980   :  { %1287 = vmatpush3.bf16.msra.mxu1 %v1579_v4 }
 0x981   :  { %1300 = vmatprep.subr.bf16.mxu1 %v1489_v0 }
 0x9dc   :  { %v570_v48 = vpop.permute.xlu0 %569 }
 0x9dd   :  { %v572_v49 = vmul.f32 %v1353_v47, %v570_v48 }
 0x9df   :  { %574 = vrot.lane.b32.xlu1 %v572_v49, %s1492_s29 }
 0xa4e   :  { %v801_v30 = vpop.f32.mrb[20].mxu1 }
 0xa4f   :  { %v1274_v31 = vpop.f32.mrb[21].mxu1 }
 0xa50   :  { %v804_v32 = vpop.f32.mrb[22].mxu1 }
 0xa51   :  { %v575_v51 = vpop.permute.xlu1 %574  ;;  %v1275_v34 = vpop.f32.mrb[23].mxu1 }
 0xa52   :  { %v577_v52 = vadd.f32 %v575_v51, %v567_v50 }
 0xa54   :  { %1354 = vtanh.f32 %v577_v52 }
 0xa5e   :  { %v1355_v55 = vpop.eup %1354 }
 0xa5f   :  { %580 = vrot.lane.b32.xlu0 %v1355_v55, %s1492_s29 }
 0xad1   :  { %v581_v56 = vpop.permute.xlu0 %580 }
 0xad2   :  { %v1684_v57 = vmul.f32 %v1353_v47, %v581_v56 }
 0xad4   :  { %v593_v58 = vpack.c.bf16 %v1684_v57, %v1684_v57 }
 0xad6   :  { %595 = vrot.lane.b32.xlu1 %v593_v58, %s1483_s25 }
 0xb48   :  { %v596_v5 = vpop.permute.xlu1 %595 }
 0xb49   :  { %1249 = vmatmul.mubr.msk.bf16.vlgmr.msra.gmra.mrb[16].mxu0 %vm83_vm1, %v596_v5 }
 0xb4a   :  { %1261 = vmatpush3.bf16.msra.mxu0 %v1570_v1  ;;  %1264 = vmatprep.mubr.msk.bf16.mxu0 %vm1490_vm0, %v1489_v0 }
 0xb4b   :  { %1262 = vmatprep.subr.bf16.mxu0 %v1489_v0 }
 0xb4e   :  { %1263 = vmatpush3.bf16.msra.mxu0 %v1575_v3 }
 0xb4f   :  { %1276 = vmatprep.subr.bf16.mxu0 %v1489_v0 }
 0xc1c   :  { %v634_v6 = vpop.f32.mrb[16].mxu0 }
 0xc1d   :  { %v678_v7 = vadd.f32 %v677_v59, %v634_v6  ;;  %v1250_v8 = vpop.f32.mrb[17].mxu0 }
 0xc1e   :  { %v637_v10 = vpop.f32.mrb[18].mxu0 }
 0xc1f   :  { %v683_v11 = vadd.f32 %v1602_v9, %v678_v7  ;;  %v1251_v12 = vpop.f32.mrb[19].mxu0 }
 0xc21   :  { %1356 = vtanh.f32 %v683_v11  ;;  %v1122_v14 = vmul.f32 -1.442695, %v683_v11 }
 0xc23   :  { %1358 = vpow2.f32 %v1122_v14 }
 0xc2b   :  { %v1357_v13 = vpop.eup %1356 }
 0xc2c   :  { %693 = vrot.lane.b32.xlu0 %v1357_v13, %s1492_s29 }
 0xc2d   :  { %v1359_v15 = vpop.eup %1358 }
 0xc2e   :  { %v687_v16 = vadd.f32 1.0, %v1359_v15 }
 0xc30   :  { %1360 = vrcp.f32 %v687_v16 }
 0xc3a   :  { %v1361_v17 = vpop.eup %1360 }
 0xc3b   :  { %v691_v20 = vmul.f32 %v1361_v17, %v577_v52  ;;  %v839_v52 = vld [vmem:[#allocation2 + $0x30] sm:$0xff] }
 0xc3c   :  { %v840_v53 = vpack.c.bf16 %v839_v52, %v839_v52 }
 0xc3e   :  { %1289 = vmatmul.mubr.msk.bf16.vlgmr.msra.gmra.mrb[24].mxu1 %vm83_vm1, %v840_v53 }
 0xc3f   :  { %1301 = vmatpush3.bf16.msra.mxu1 %v1572_v2  ;;  %1304 = vmatprep.mubr.msk.bf16.mxu1 %vm1490_vm0, %v1489_v0 }
 0xc40   :  { %1302 = vmatprep.subr.bf16.mxu1 %v1489_v0 }
 0xc43   :  { %1303 = vmatpush3.bf16.msra.mxu1 %v1579_v4 }
 0xc9e   :  { %v694_v18 = vpop.permute.xlu0 %693 }
 0xc9f   :  { %v696_v19 = vmul.f32 %v1361_v17, %v694_v18  ;;  %v963_v18 = vld [vmem:[#allocation2 + $0x38] sm:$0xff] }
 0xca1   :  { %698 = vrot.lane.b32.xlu1 %v696_v19, %s1492_s29  ;;  %v964_v19 = vpack.c.bf16 %v963_v18, %v963_v18 }
 0xca3   :  { %1305 = vmatmul.mubr.msk.bf16.vlgmr.msra.gmra.mrb[28].mxu1 %vm83_vm1, %v964_v19 }
 0xd11   :  { %v925_v59 = vpop.f32.mrb[24].mxu1 }
 0xd12   :  { %v1290_v2 = vpop.f32.mrb[25].mxu1 }
 0xd13   :  { %v699_v21 = vpop.permute.xlu1 %698  ;;  %v928_v61 = vpop.f32.mrb[26].mxu1 }
 0xd14   :  { %v701_v22 = vadd.f32 %v699_v21, %v691_v20  ;;  %v1291_v62 = vpop.f32.mrb[27].mxu1 }
 0xd16   :  { %1362 = vtanh.f32 %v701_v22 }
 0xd20   :  { %v1363_v25 = vpop.eup %1362 }
 0xd21   :  { %704 = vrot.lane.b32.xlu0 %v1363_v25, %s1492_s29 }
 0xd76   :  { %v1049_v24 = vpop.f32.mrb[28].mxu1 }
 0xd77   :  { %v1306_v25 = vpop.f32.mrb[29].mxu1 }
 0xd93   :  { %v705_v26 = vpop.permute.xlu0 %704 }
 0xd94   :  { %v1707_v27 = vmul.f32 %v1361_v17, %v705_v26  ;;  %v1052_v26 = vpop.f32.mrb[30].mxu1 }
 0xd96   :  { %v717_v28 = vpack.c.bf16 %v1707_v27, %v1707_v27 }
 0xd98   :  { %719 = vrot.lane.b32.xlu1 %v717_v28, %s1483_s25  ;;  %v1307_v28 = vpop.f32.mrb[31].mxu1 }
 0xe0a   :  { %v720_v35 = vpop.permute.xlu1 %719 }
 0xe0b   :  { %1265 = vmatmul.mubr.msk.bf16.vlgmr.msra.gmra.mrb[20].mxu0 %vm83_vm1, %v720_v35 }
 0xe0c   :  { %1277 = vmatpush3.bf16.msra.mxu0 %v1570_v1  ;;  %1280 = vmatprep.mubr.msk.bf16.mxu0 %vm1490_vm0, %v1489_v0 }
 0xe0d   :  { %1278 = vmatprep.subr.bf16.mxu0 %v1489_v0 }
 0xe10   :  { %1279 = vmatpush3.bf16.msra.mxu0 %v1575_v3 }
 0xe11   :  { %1292 = vmatprep.subr.bf16.mxu0 %v1489_v0 }
 0xede   :  { %v758_v36 = vpop.f32.mrb[20].mxu0 }
 0xedf   :  { %v802_v37 = vadd.f32 %v801_v30, %v758_v36  ;;  %v1266_v38 = vpop.f32.mrb[21].mxu0 }
 0xee0   :  { %v761_v39 = vpop.f32.mrb[22].mxu0 }
 0xee1   :  { %v807_v40 = vadd.f32 %v1602_v9, %v802_v37  ;;  %v1267_v41 = vpop.f32.mrb[23].mxu0 }
 0xee3   :  { %1364 = vtanh.f32 %v807_v40  ;;  %v1125_v43 = vmul.f32 -1.442695, %v807_v40 }
 0xee5   :  { %1366 = vpow2.f32 %v1125_v43 }
 0xeed   :  { %v1365_v42 = vpop.eup %1364 }
 0xeee   :  { %817 = vrot.lane.b32.xlu0 %v1365_v42, %s1492_s29 }
 0xeef   :  { %v1367_v44 = vpop.eup %1366 }
 0xef0   :  { %v811_v45 = vadd.f32 1.0, %v1367_v44 }
 0xef2   :  { %1368 = vrcp.f32 %v811_v45 }
 0xefc   :  { %v1369_v46 = vpop.eup %1368 }
 0xefd   :  { %v815_v49 = vmul.f32 %v1369_v46, %v701_v22 }
 0xf60   :  { %v818_v47 = vpop.permute.xlu0 %817 }
 0xf61   :  { %v820_v48 = vmul.f32 %v1369_v46, %v818_v47 }
 0xf63   :  { %822 = vrot.lane.b32.xlu1 %v820_v48, %s1492_s29 }
 0xfd5   :  { %v823_v50 = vpop.permute.xlu1 %822 }
 0xfd6   :  { %v825_v51 = vadd.f32 %v823_v50, %v815_v49 }
 0xfd8   :  { %1370 = vtanh.f32 %v825_v51 }
 0xfe2   :  { %v1371_v54 = vpop.eup %1370 }
 0xfe3   :  { %828 = vrot.lane.b32.xlu0 %v1371_v54, %s1492_s29 }
0x1055   :  { %v829_v55 = vpop.permute.xlu0 %828 }
0x1056   :  { %v1729_v56 = vmul.f32 %v1369_v46, %v829_v55 }
0x1058   :  { %v841_v58 = vpack.c.bf16 %v1729_v56, %v1729_v56 }
0x105a   :  { %843 = vrot.lane.b32.xlu1 %v841_v58, %s1483_s25 }
0x10cc   :  { %v844_v63 = vpop.permute.xlu1 %843 }
0x10cd   :  { %1281 = vmatmul.mubr.msk.bf16.vlgmr.msra.gmra.mrb[24].mxu0 %vm83_vm1, %v844_v63 }
0x10ce   :  { %1293 = vmatpush3.bf16.msra.mxu0 %v1570_v1  ;;  %1296 = vmatprep.mubr.msk.bf16.mxu0 %vm1490_vm0, %v1489_v0 }
0x10cf   :  { %1294 = vmatprep.subr.bf16.mxu0 %v1489_v0 }
0x10d2   :  { %1295 = vmatpush3.bf16.msra.mxu0 %v1575_v3 }
0x11a0   :  { %v882_v4 = vpop.f32.mrb[24].mxu0 }
0x11a1   :  { %v926_v5 = vadd.f32 %v925_v59, %v882_v4  ;;  %v1282_v6 = vpop.f32.mrb[25].mxu0 }
0x11a2   :  { %v885_v7 = vpop.f32.mrb[26].mxu0 }
0x11a3   :  { %v931_v8 = vadd.f32 %v1602_v9, %v926_v5  ;;  %v1283_v10 = vpop.f32.mrb[27].mxu0 }
0x11a5   :  { %1372 = vtanh.f32 %v931_v8  ;;  %v1128_v12 = vmul.f32 -1.442695, %v931_v8 }
0x11a7   :  { %1374 = vpow2.f32 %v1128_v12 }
0x11af   :  { %v1373_v11 = vpop.eup %1372 }
0x11b0   :  { %941 = vrot.lane.b32.xlu0 %v1373_v11, %s1492_s29 }
0x11b1   :  { %v1375_v1 = vpop.eup %1374 }
0x11b2   :  { %v935_v13 = vadd.f32 1.0, %v1375_v1 }
0x11b4   :  { %1376 = vrcp.f32 %v935_v13 }
0x11be   :  { %v1377_v14 = vpop.eup %1376 }
0x11bf   :  { %v939_v3 = vmul.f32 %v1377_v14, %v825_v51 }
0x1222   :  { %v942_v0 = vpop.permute.xlu0 %941 }
0x1223   :  { %v944_v15 = vmul.f32 %v1377_v14, %v942_v0 }
0x1225   :  { %946 = vrot.lane.b32.xlu1 %v944_v15, %s1492_s29 }
0x1297   :  { %v947_v16 = vpop.permute.xlu1 %946 }
0x1298   :  { %v949_v17 = vadd.f32 %v947_v16, %v939_v3 }
0x129a   :  { %1378 = vtanh.f32 %v949_v17 }
0x12a4   :  { %v1379_v20 = vpop.eup %1378 }
0x12a5   :  { %952 = vrot.lane.b32.xlu0 %v1379_v20, %s1492_s29 }
0x1317   :  { %v953_v21 = vpop.permute.xlu0 %952 }
0x1318   :  { %v955_v22 = vmul.f32 %v1377_v14, %v953_v21 }
0x131a   :  { %v965_v23 = vpack.c.bf16 %v955_v22, %v955_v22 }
0x131c   :  { %967 = vrot.lane.b32.xlu1 %v965_v23, %s1483_s25 }
0x138e   :  { %v968_v30 = vpop.permute.xlu1 %967 }
0x138f   :  { %1297 = vmatmul.mubr.msk.bf16.vlgmr.msra.gmra.mrb[28].mxu0 %vm83_vm1, %v968_v30 }
0x1462   :  { %v1006_v31 = vpop.f32.mrb[28].mxu0 }
0x1463   :  { %v1050_v32 = vadd.f32 %v1049_v24, %v1006_v31  ;;  %v1298_v34 = vpop.f32.mrb[29].mxu0 }
0x1464   :  { %v1009_v35 = vpop.f32.mrb[30].mxu0 }
0x1465   :  { %v1055_v36 = vadd.f32 %v1602_v9, %v1050_v32  ;;  %v1299_v37 = vpop.f32.mrb[31].mxu0 }
0x1467   :  { %1380 = vtanh.f32 %v1055_v36  ;;  %v1131_v39 = vmul.f32 -1.442695, %v1055_v36 }
0x1469   :  { %1382 = vpow2.f32 %v1131_v39 }
0x1471   :  { %v1381_v38 = vpop.eup %1380 }
0x1472   :  { %1065 = vrot.lane.b32.xlu0 %v1381_v38, %s1492_s29 }
0x1473   :  { %v1383_v40 = vpop.eup %1382 }
0x1474   :  { %v1059_v41 = vadd.f32 1.0, %v1383_v40 }
0x1476   :  { %1384 = vrcp.f32 %v1059_v41 }
0x1480   :  { %v1385_v42 = vpop.eup %1384 }
0x1481   :  { %v1063_v9 = vmul.f32 %v1385_v42, %v949_v17 }
0x14e4   :  { %v1066_v43 = vpop.permute.xlu0 %1065 }
0x14e5   :  { %v1068_v44 = vmul.f32 %v1385_v42, %v1066_v43 }
0x14e7   :  { %1070 = vrot.lane.b32.xlu1 %v1068_v44, %s1492_s29 }
0x14eb   :  { %214 = vrot.lane.b32.xlu1 %v1615_v33, %s1483_s25 }
0x14ef   :  { %461 = vrot.lane.b32.xlu1 %v1661_v29, %s1483_s25 }
0x14f3   :  { %709 = vrot.lane.b32.xlu1 %v1707_v27, %s1483_s25 }
0x14f7   :  { %957 = vrot.lane.b32.xlu1 %v955_v22, %s1483_s25 }
0x1559   :  { %v1071_v45 = vpop.permute.xlu1 %1070 }
0x155a   :  { %v1073_v46 = vadd.f32 %v1071_v45, %v1063_v9 }
0x155c   :  { %1386 = vtanh.f32 %v1073_v46 }
0x155d   :  { %v215_v47 = vpop.permute.xlu1 %214 }
0x155e   :  { %217 = vst.msk [vmem:[#allocation8] sm:$0xff] %vm83_vm1, %v215_v47 }
0x1561   :  { %v462_v48 = vpop.permute.xlu1 %461 }
0x1562   :  { %465 = vst.msk [vmem:[#allocation8 + $0x10] sm:$0xff] %vm83_vm1, %v462_v48 }
0x1565   :  { %v710_v49 = vpop.permute.xlu1 %709 }
0x1566   :  { %v1387_v33 = vpop.eup %1386  ;;  %713 = vst.msk [vmem:[#allocation8 + $0x20] sm:$0xff] %vm83_vm1, %v710_v49 }
0x1567   :  { %1076 = vrot.lane.b32.xlu0 %v1387_v33, %s1492_s29 }
0x1569   :  { %v958_v29 = vpop.permute.xlu1 %957 }
0x156a   :  { %961 = vst.msk [vmem:[#allocation8 + $0x30] sm:$0xff] %vm83_vm1, %v958_v29 }
0x156b   :  { %337 = vrot.lane.b32.xlu0 %v1638_v60, %s1483_s25 }
0x156f   :  { %585 = vrot.lane.b32.xlu0 %v1684_v57, %s1483_s25 }
0x1573   :  { %833 = vrot.lane.b32.xlu0 %v1729_v56, %s1483_s25 }
0x15d9   :  { %v1077_v27 = vpop.permute.xlu0 %1076 }
0x15da   :  { %v1079_v50 = vmul.f32 %v1385_v42, %v1077_v27 }
0x15dc   :  { %1081 = vrot.lane.b32.xlu0 %v1079_v50, %s1483_s25 }
0x15dd   :  { %v338_v51 = vpop.permute.xlu0 %337 }
0x15de   :  { %341 = vst.msk [vmem:[#allocation8 + $0x8] sm:$0xff] %vm83_vm1, %v338_v51 }
0x15e1   :  { %v586_v52 = vpop.permute.xlu0 %585 }
0x15e2   :  { %589 = vst.msk [vmem:[#allocation8 + $0x18] sm:$0xff] %vm83_vm1, %v586_v52 }
0x15e5   :  { %v834_v53 = vpop.permute.xlu0 %833 }
0x15e6   :  { %837 = vst.msk [vmem:[#allocation8 + $0x28] sm:$0xff] %vm83_vm1, %v834_v53 }
0x164e   :  { %v1082_v60 = vpop.permute.xlu0 %1081 }
0x164f   :  { %1085 = vst.msk [vmem:[#allocation8 + $0x38] sm:$0xff] %vm83_vm1, %v1082_v60 }
0x1650   :  { %1465 = shalt.err (!%p1462_p0)
}
0x1651   :  { %s1466_s7 = scalar_lea.hbm %s1792_s4, 1024 }
0x1652   :  { %p1467_p1 = scmp.ne.s32.totalorder %s1792_s4, %s1466_s7  ;;  %p1470_p2 = scmp.lt.u32.totalorder %s1466_s7, %s1792_s4 }
0x1654   :  { %p1472_p3 = pnand %p1470_p2, %p1467_p1 }
0x1656   :  { %1475 = shalt.err (!%p1472_p3)
}
0x1657   :  { %1097 = dma.vmem_to_hbm [thread:$0]  %s1092_s30, 1024, %s1792_s4, [#allocation4], %s1486_s1, %s1486_s1, %s1487_s13  }
0x1658   :  { %1480 = dma.done.wait [#allocation4], 1024  }
0x1659   :  { %1481 = vsyncadd [#allocation4], 4294966272 }
0x165a   :  { %1101 = vsyncpa [#allocation3], 1 }
0x165b   :  { %1102 = vsyncpa [#allocation6], 1 }
0x165c   :  { %1103 = vsyncpa [#allocation4], 1 }

</bundles_post_ra>
